<compile_context>
chip_gen: v7x
topology: tpu7x:2x2x1
jax: 0.10.0
libtpu: 0.0.40
codegen_flags: <defaults>
</compile_context>

<pallas_src>
import functools

import jax
import jax.numpy as jnp
from jax.experimental import pallas as pl
from jax.experimental.pallas import tpu as pltpu

_LANE = 128
# Safe on all generations: well above the ~20 MiB actually used at the largest
# default tiles, above v5e's 16 MiB default scoped limit, below v7x's 64 MiB
# physical VMEM.
_VMEM_LIMIT = 40 * 1024 * 1024


def _round_up(x, m):
    return ((x + m - 1) // m) * m


def _pick_tile(n, target):
    """Largest multiple of 128 that divides n and is <= target.

    n is always a multiple of 128 here (the wrapper pads to guarantee it), so
    the grid never collapses to whole-array blocks.
    """
    best = _LANE
    t = _LANE
    limit = min(target, n)
    while t <= limit:
        if n % t == 0:
            best = t
        t += _LANE
    return best


# ----------------------------- Pallas kernels ------------------------------ #
def _mlp_kernel(x_ref, w1_ref, b1_ref, w2_ref, b2_ref, z_ref):
    # lin1 + ReLU, then lin2 (dropout is identity in eval mode).
    h = jnp.dot(x_ref[...], w1_ref[...], preferred_element_type=jnp.float32)
    h = jnp.maximum(h + b1_ref[...], 0.0)
    z = jnp.dot(h, w2_ref[...], preferred_element_type=jnp.float32) + b2_ref[...]
    z_ref[...] = z.astype(z_ref.dtype)


def _utz_kernel(u_ref, z_ref, g_ref, out_ref, acc_ref):
    # Accumulate a (tm, Cp) block of U^T @ z over the reduction axis (rows of
    # U), finalize with the spectral scale g.  The transposed-LHS dot_general
    # (contraction on dim 0 of the bf16 U tile) avoids pre-materializing U^T in
    # HBM; any XLU shuffle it lowers to rides the otherwise-idle vector-extended
    # slot and is hidden under the U DMA in this memory-bound regime.
    @pl.when(pl.program_id(1) == 0)
    def _():
        acc_ref[...] = jnp.zeros_like(acc_ref)

    acc_ref[...] += jax.lax.dot_general(
        u_ref[...], z_ref[...], (((0,), (0,)), ((), ())),
        preferred_element_type=jnp.float32)

    @pl.when(pl.program_id(1) == pl.num_programs(1) - 1)
    def _():
        out_ref[...] = (g_ref[...] * acc_ref[...]).astype(out_ref.dtype)


def _prop_softmax_kernel(u_ref, gutz_ref, out_ref, acc_ref, *, num_classes):
    # Accumulate U @ (g * U^T z); finalize with a masked log-softmax over the
    # real class lanes (the rest of the 128-wide slab is zero padding).
    @pl.when(pl.program_id(1) == 0)
    def _():
        acc_ref[...] = jnp.zeros_like(acc_ref)

    acc_ref[...] += jnp.dot(u_ref[...], gutz_ref[...],
                            preferred_element_type=jnp.float32)

    @pl.when(pl.program_id(1) == pl.num_programs(1) - 1)
    def _():
        y = acc_ref[...]
        col = jax.lax.broadcasted_iota(jnp.int32, y.shape, 1)
        valid = col < num_classes
        m = jnp.max(jnp.where(valid, y, -jnp.inf), axis=1, keepdims=True)
        s = y - m
        p = jnp.where(valid, jnp.exp(s), 0.0)
        lse = jnp.log(jnp.sum(p, axis=1, keepdims=True))
        out_ref[...] = s - lse


# ------------------------------ Host wrapper ------------------------------- #
def gprgnn_forward(temp, origin_e, U, x, w1, b1, w2, b2,
                   *, tile_m=2048, tile_k=2048, tile_m_mlp=512):
    """temp:(K+1,) e:(N,) U:(N,N) x:(N,Fin) w1:(Fin,H) b1:(H,) w2:(H,C) b2:(C,)"""
    f32, bf16 = jnp.float32, jnp.bfloat16
    N, Fin = x.shape
    H = w1.shape[1]
    C = w2.shape[1]
    K = temp.shape[0] - 1

    Np = _round_up(N, _LANE)        # node dim padded so tiling never collapses
    Hp = _round_up(H, _LANE)        # lane-dense hidden width
    Cp = _round_up(C, _LANE)        # lane-dense class width (keep at 128)

    # Zero-padding extra hidden/class columns does not change the math.
    w1p = jnp.zeros((Fin, Hp), f32).at[:, :H].set(w1.astype(f32))
    b1p = jnp.zeros((1, Hp), f32).at[:, :H].set(b1.astype(f32))
    w2p = jnp.zeros((Hp, Cp), f32).at[:H, :C].set(w2.astype(f32))
    b2p = jnp.zeros((1, Cp), f32).at[:, :C].set(b2.astype(f32))

    # GPR polynomial filter g = sum_k temp[k] * e^k (host-side, O(N*K), trivial).
    temp = temp.astype(f32)
    e = origin_e.astype(f32)
    g = temp[0] * jnp.ones_like(e)           # e**0 == 1 (incl. e == 0)
    ek = jnp.ones_like(e)
    for k in range(K):
        ek = ek * e
        g = g + temp[k + 1] * ek
    gp = jnp.zeros((Np, 1), f32).at[:N, 0].set(g)

    # Zero-padded U rows/cols contribute nothing to the real outputs; padded x
    # rows only feed zero U columns, so their (nonzero) z rows are harmless.
    u_bf16 = jnp.zeros((Np, Np), bf16).at[:N, :N].set(U.astype(bf16))
    xp = jnp.zeros((Np, Fin), f32).at[:N, :].set(x.astype(f32))

    # Row tile capped at Np//2 so the "parallel" row axis always has >= 2
    # blocks (keeps both v7x TensorCores busy); reduction tile as large as fits.
    row_cap = max(_LANE, (Np // 2) // _LANE * _LANE)
    tm = _pick_tile(Np, min(tile_m, row_cap))     # output-row tile (stages 2/3)
    tk = _pick_tile(Np, tile_k)                   # reduction tile  (stages 2/3)
    tm1 = _pick_tile(Np, tile_m_mlp)              # row tile for the small MLP

    # ---- Stage 1: z = relu(x @ W1 + b1) @ W2 + b2 (rows tiled, weights resident).
    z = pl.pallas_call(
        _mlp_kernel,
        out_shape=jax.ShapeDtypeStruct((Np, Cp), bf16),
        grid=(Np // tm1,),
        in_specs=[
            pl.BlockSpec((tm1, Fin), lambda i: (i, 0)),
            pl.BlockSpec((Fin, Hp), lambda i: (0, 0)),
            pl.BlockSpec((1, Hp), lambda i: (0, 0)),
            pl.BlockSpec((Hp, Cp), lambda i: (0, 0)),
            pl.BlockSpec((1, Cp), lambda i: (0, 0)),
        ],
        out_specs=pl.BlockSpec((tm1, Cp), lambda i: (i, 0)),
        compiler_params=pltpu.CompilerParams(
            dimension_semantics=("parallel",),
            vmem_limit_bytes=_VMEM_LIMIT),
        cost_estimate=pl.CostEstimate(
            flops=2 * Np * (Fin * Hp + Hp * Cp), transcendentals=0,
            bytes_accessed=4 * Np * Fin + 4 * (Fin * Hp + Hp * Cp) + 2 * Np * Cp),
    )(xp, w1p, b1p, w2p, b2p)

    # ---- Stage 2: gutz = g * (U^T @ z); reduction over U rows is the last axis.
    gutz = pl.pallas_call(
        _utz_kernel,
        out_shape=jax.ShapeDtypeStruct((Np, Cp), bf16),
        grid=(Np // tm, Np // tk),
        in_specs=[
            pl.BlockSpec((tk, tm), lambda i, k: (k, i)),   # U[k, i] (contract rows)
            pl.BlockSpec((tk, Cp), lambda i, k: (k, 0)),   # z[k]
            pl.BlockSpec((tm, 1), lambda i, k: (i, 0)),    # g[i]
        ],
        out_specs=pl.BlockSpec((tm, Cp), lambda i, k: (i, 0)),
        scratch_shapes=[pltpu.VMEM((tm, Cp), f32)],
        compiler_params=pltpu.CompilerParams(
            dimension_semantics=("parallel", "arbitrary"),
            vmem_limit_bytes=_VMEM_LIMIT),
        cost_estimate=pl.CostEstimate(
            flops=2 * Np * Np * Cp, transcendentals=0,
            bytes_accessed=2 * Np * Np + 2 * (Np // tm) * Np * Cp + 6 * Np * Cp),
    )(u_bf16, z, gp)

    # ---- Stage 3: y = U @ gutz, then masked log-softmax over the real classes.
    out_padded = pl.pallas_call(
        functools.partial(_prop_softmax_kernel, num_classes=C),
        out_shape=jax.ShapeDtypeStruct((Np, Cp), f32),
        grid=(Np // tm, Np // tk),
        in_specs=[
            pl.BlockSpec((tm, tk), lambda i, k: (i, k)),   # U[i, k]
            pl.BlockSpec((tk, Cp), lambda i, k: (k, 0)),   # gutz[k]
        ],
        out_specs=pl.BlockSpec((tm, Cp), lambda i, k: (i, 0)),
        scratch_shapes=[pltpu.VMEM((tm, Cp), f32)],
        compiler_params=pltpu.CompilerParams(
            dimension_semantics=("parallel", "arbitrary"),
            vmem_limit_bytes=_VMEM_LIMIT),
        cost_estimate=pl.CostEstimate(
            flops=2 * Np * Np * Cp, transcendentals=Np * Cp,
            bytes_accessed=2 * Np * Np + 2 * (Np // tm) * Np * Cp + 4 * Np * Cp),
    )(u_bf16, gutz)

    # Only the [:N, :C] slab is meaningful (padded lanes/rows hold junk).
    return out_padded[:N, :C]


# ---------------------------- Pure-JAX reference ---------------------------- #
def gprgnn_reference(temp, origin_e, U, x, w1, b1, w2, b2):
    h = jax.nn.relu(x @ w1 + b1)
    z = h @ w2 + b2
    K = temp.shape[0] - 1
    scale = temp[0] * jnp.ones_like(origin_e)
    for k in range(K):
        scale = scale + temp[k + 1] * origin_e ** (k + 1)
    y = U @ (scale[:, None] * (U.T @ z))
    return jax.nn.log_softmax(y, axis=1)


# ---------------------------------- Main ------------------------------------ #
if __name__ == "__main__":
    # Small, TPU-friendly shapes consistent with the module's forward.
    N, Fin, H, C = 384, 64, 32, 8        # nodes, in-features, hidden, classes
    K, alpha = 10, 0.1                   # GPR_prop hyperparameters (Init='PPR')

    key = jax.random.PRNGKey(0)
    k_e, k_u, k_x, k_w1, k_b1, k_w2, k_b2 = jax.random.split(key, 7)

    origin_e = jax.random.uniform(k_e, (N,), jnp.float32, 0.0, 1.0)   # eigenvalues
    U = jax.random.normal(k_u, (N, N), jnp.float32) / jnp.sqrt(N)     # eigenvectors
    x = jax.random.normal(k_x, (N, Fin), jnp.float32)

    # Deterministic parameter init (PyTorch Linear-style uniform bounds).
    bd1 = 1.0 / jnp.sqrt(Fin)
    w1 = jax.random.uniform(k_w1, (Fin, H), jnp.float32, -bd1, bd1)   # lin1 (transposed)
    b1 = jax.random.uniform(k_b1, (H,), jnp.float32, -bd1, bd1)
    bd2 = 1.0 / jnp.sqrt(H)
    w2 = jax.random.uniform(k_w2, (H, C), jnp.float32, -bd2, bd2)     # lin2 (transposed)
    b2 = jax.random.uniform(k_b2, (C,), jnp.float32, -bd2, bd2)

    # GPR_prop 'PPR' init: temp[k] = alpha*(1-alpha)^k, temp[K] = (1-alpha)^K
    temp = alpha * (1.0 - alpha) ** jnp.arange(K + 1, dtype=jnp.float32)
    temp = temp.at[-1].set((1.0 - alpha) ** K)

    # TODO(synk): F.dropout is training-only stochastic masking; inference mode
    # (training=False) makes it an identity, which is what is implemented here.

    out = gprgnn_forward(temp, origin_e, U, x, w1, b1, w2, b2)
    out = jax.block_until_ready(out)

    ref = gprgnn_reference(temp, origin_e, U, x, w1, b1, w2, b2)
    assert out.shape == (N, C)
    assert jnp.allclose(out, ref, rtol=1e-2, atol=1e-2), "mismatch vs JAX reference"

    print("KERNEL_OK")
</pallas_src>

<mosaic_0001>
module attributes {stable_mosaic.version = 11 : i64} {
  func.func @_mlp_kernel(%arg0: i32, %arg1: memref<384x64xf32, #tpu.memory_space<vmem>>, %arg2: memref<64x128xf32, #tpu.memory_space<vmem>>, %arg3: memref<1x128xf32, #tpu.memory_space<vmem>>, %arg4: memref<128x128xf32, #tpu.memory_space<vmem>>, %arg5: memref<1x128xf32, #tpu.memory_space<vmem>>, %arg6: memref<384x128xbf16, #tpu.memory_space<vmem>>) attributes {dimension_semantics = [#tpu.dimension_semantics<parallel>], iteration_bounds = array<i64: 1>, scalar_prefetch = 0 : i64, scratch_operands = 0 : i64, tpu.core_type = #tpu.core_type<tc>, window_params = [{transform_indices = @transform_0, window_bounds = array<i64: 384, 64>}, {pipeline_mode = #tpu.pipeline_mode<synchronous>, transform_indices = @transform_1, window_bounds = array<i64: 64, 128>}, {pipeline_mode = #tpu.pipeline_mode<synchronous>, transform_indices = @transform_2, window_bounds = array<i64: 1, 128>}, {pipeline_mode = #tpu.pipeline_mode<synchronous>, transform_indices = @transform_3, window_bounds = array<i64: 128, 128>}, {pipeline_mode = #tpu.pipeline_mode<synchronous>, transform_indices = @transform_4, window_bounds = array<i64: 1, 128>}, {transform_indices = @transform_5, window_bounds = array<i64: 384, 128>}]} {
    %c0 = arith.constant 0 : index
    %c0_0 = arith.constant 0 : index
    %0 = vector.load %arg1[%c0, %c0_0] : memref<384x64xf32, #tpu.memory_space<vmem>>, vector<384x64xf32>
    %c0_1 = arith.constant 0 : index
    %c0_2 = arith.constant 0 : index
    %1 = vector.load %arg2[%c0_1, %c0_2] : memref<64x128xf32, #tpu.memory_space<vmem>>, vector<64x128xf32>
    %cst = arith.constant dense<0.000000e+00> : vector<384x128xf32>
    %2 = tpu.matmul %0, %1, %cst {dimension_numbers = #tpu.dot_dimension_numbers<[1], [0], [0], [1], [0, 0, 1, 1], [], []>} : vector<384x64xf32>, vector<64x128xf32>, vector<384x128xf32> -> vector<384x128xf32>
    %c0_3 = arith.constant 0 : index
    %c0_4 = arith.constant 0 : index
    %3 = vector.load %arg3[%c0_3, %c0_4] : memref<1x128xf32, #tpu.memory_space<vmem>>, vector<1x128xf32>
    %4 = vector.broadcast %3 : vector<1x128xf32> to vector<384x128xf32>
    %5 = arith.addf %2, %4 : vector<384x128xf32>
    %cst_5 = arith.constant 0.000000e+00 : f32
    %6 = vector.broadcast %cst_5 : f32 to vector<384x128xf32>
    %7 = arith.maximumf %5, %6 : vector<384x128xf32>
    %c0_6 = arith.constant 0 : index
    %c0_7 = arith.constant 0 : index
    %8 = vector.load %arg4[%c0_6, %c0_7] : memref<128x128xf32, #tpu.memory_space<vmem>>, vector<128x128xf32>
    %cst_8 = arith.constant dense<0.000000e+00> : vector<384x128xf32>
    %9 = tpu.matmul %7, %8, %cst_8 {dimension_numbers = #tpu.dot_dimension_numbers<[1], [0], [0], [1], [0, 0, 1, 1], [], []>} : vector<384x128xf32>, vector<128x128xf32>, vector<384x128xf32> -> vector<384x128xf32>
    %c0_9 = arith.constant 0 : index
    %c0_10 = arith.constant 0 : index
    %10 = vector.load %arg5[%c0_9, %c0_10] : memref<1x128xf32, #tpu.memory_space<vmem>>, vector<1x128xf32>
    %11 = vector.broadcast %10 : vector<1x128xf32> to vector<384x128xf32>
    %12 = arith.addf %9, %11 : vector<384x128xf32>
    %13 = arith.truncf %12 : vector<384x128xf32> to vector<384x128xbf16>
    %c0_11 = arith.constant 0 : index
    %c0_12 = arith.constant 0 : index
    %14 = vector.load %arg6[%c0_11, %c0_12] : memref<384x128xbf16, #tpu.memory_space<vmem>>, vector<384x128xbf16>
    tpu.vector_store %arg6[%c0_11, %c0_12], %13 {strides = array<i32>} : memref<384x128xbf16, #tpu.memory_space<vmem>>, vector<384x128xbf16>,
    return
  }
  func.func @transform_0(%arg0: i32) -> (i32, i32) {
    %c0_i32 = arith.constant 0 : i32
    %c0_i32_0 = arith.constant 0 : i32
    return %arg0, %c0_i32 : i32, i32
  }
  func.func @transform_1(%arg0: i32) -> (i32, i32) {
    %c0_i32 = arith.constant 0 : i32
    %c0_i32_0 = arith.constant 0 : i32
    %c0_i32_1 = arith.constant 0 : i32
    return %c0_i32, %c0_i32_0 : i32, i32
  }
  func.func @transform_2(%arg0: i32) -> (i32, i32) {
    %c0_i32 = arith.constant 0 : i32
    %c0_i32_0 = arith.constant 0 : i32
    %c0_i32_1 = arith.constant 0 : i32
    return %c0_i32, %c0_i32_0 : i32, i32
  }
  func.func @transform_3(%arg0: i32) -> (i32, i32) {
    %c0_i32 = arith.constant 0 : i32
    %c0_i32_0 = arith.constant 0 : i32
    %c0_i32_1 = arith.constant 0 : i32
    return %c0_i32, %c0_i32_0 : i32, i32
  }
  func.func @transform_4(%arg0: i32) -> (i32, i32) {
    %c0_i32 = arith.constant 0 : i32
    %c0_i32_0 = arith.constant 0 : i32
    %c0_i32_1 = arith.constant 0 : i32
    return %c0_i32, %c0_i32_0 : i32, i32
  }
  func.func @transform_5(%arg0: i32) -> (i32, i32) {
    %c0_i32 = arith.constant 0 : i32
    %c0_i32_0 = arith.constant 0 : i32
    return %arg0, %c0_i32 : i32, i32
  }
}

</mosaic_0001>

<bundles_post_ra>
// kernel: tpu_custom_call.1
= control target key start
LH: loop header
LB: loop body
LE: loop exit
PB: predicated region body
PF: predicated region fallthrough
CT: control target
= control target key end

     0   :  { %vm84_vm0 = vcmask 523264   ;;  %s2273_s0 = inlined_call_operand.vmem [shape: f32[384,64], index: 0, kind: input, shape index: {}]   ;;  %s2274_s1 = inlined_call_operand.vmem [shape: f32[64,128], index: 1, kind: input, shape index: {}]   ;;  %s2275_s2 = inlined_call_operand.vmem [shape: f32[1,128], index: 2, kind: input, shape index: {}]   ;;  %s2276_s3 = inlined_call_operand.vmem [shape: f32[128,128], index: 3, kind: input, shape index: {}]   ;;  %s2277_s4 = inlined_call_operand.vmem [shape: f32[1,128], index: 4, kind: input, shape index: {}]   ;;  %s2278_s5 = inlined_call_operand.hbm [shape: bf16[384,128], index: 5, kind: output, shape index: {}]  }
   0x1   :  { %v69_v0 = vld [vmem:[%s2274_s1] sm:$0xff]  ;;  %v70_v1 = vld [vmem:[%s2274_s1 + $0x8] sm:$0xff]  ;;  %v71_v2 = vld [vmem:[%s2274_s1 + $0x10] sm:$0xff] }
   0x2   :  { %v1767_v3 = vpack.c.bf16 %v70_v1, %v69_v0  ;;  %v72_v4 = vld [vmem:[%s2274_s1 + $0x18] sm:$0xff]  ;;  %v73_v6 = vld [vmem:[%s2274_s1 + $0x20] sm:$0xff]  ;;  %v74_v7 = vld [vmem:[%s2274_s1 + $0x28] sm:$0xff] }
   0x3   :  { %v1771_v5 = vpack.c.bf16 %v72_v4, %v71_v2  ;;  %v21_v8 = vld [vmem:[%s2273_s0] sm:$0xff]  ;;  %v1775_v9 = vpack.c.bf16 %v74_v7, %v73_v6  ;;  %v75_v10 = vld [vmem:[%s2274_s1 + $0x30] sm:$0xff]  ;;  %v76_v11 = vld [vmem:[%s2274_s1 + $0x38] sm:$0xff] }
   0x4   :  { %1768 = vmatprep.subr.bf16.mxu0 %v1767_v3  ;;  %1591 = vmatprep.mubr.msk.f32.mxu0 %vm84_vm0, %v21_v8  ;;  %v1779_v12 = vpack.c.bf16 %v76_v11, %v75_v10  ;;  %v22_v13 = vld [vmem:[%s2273_s0 + $0x8] sm:$0xff]  ;;  %v23_v14 = vld [vmem:[%s2273_s0 + $0x10] sm:$0xff]  ;;  %v582_v15 = vld [vmem:[%s2276_s3] sm:$0xff] }
   0x5   :  { %1770 = vmatpush3.bf16.msra.mxu0 %v1767_v3  ;;  %v583_v16 = vld [vmem:[%s2276_s3 + $0x8] sm:$0xff]  ;;  %v584_v17 = vld [vmem:[%s2276_s3 + $0x10] sm:$0xff]  ;;  %v585_v18 = vld [vmem:[%s2276_s3 + $0x18] sm:$0xff] }
   0x6   :  { %1772 = vmatprep.subr.bf16.mxu0 %v1771_v5  ;;  %v24_v19 = vld [vmem:[%s2273_s0 + $0x18] sm:$0xff]  ;;  %v1783_v20 = vpack.c.bf16 %v583_v16, %v582_v15  ;;  %v25_v21 = vld [vmem:[%s2273_s0 + $0x20] sm:$0xff]  ;;  %v1787_v22 = vpack.c.bf16 %v585_v18, %v584_v17  ;;  %v587_v24 = vld [vmem:[%s2276_s3 + $0x28] sm:$0xff] }
   0x7   :  { %v586_v23 = vld [vmem:[%s2276_s3 + $0x20] sm:$0xff] }
   0x8   :  { %1815 = vmatprep.subr.bf16.mxu1 %v1783_v20 }
   0x9   :  { %1774 = vmatpush3.bf16.msra.mxu0 %v1771_v5  ;;  %1823 = vmatpush3.bf16.msra.mxu1 %v1783_v20 }
   0xa   :  { %1776 = vmatprep.subr.bf16.mxu0 %v1775_v9 }
   0xd   :  { %1778 = vmatpush3.bf16.msra.mxu0 %v1775_v9 }
   0xe   :  { %1780 = vmatprep.subr.bf16.mxu0 %v1779_v12 }
  0x11   :  { %1782 = vmatpush3.bf16.msra.mxu0 %v1779_v12 }
  0x12   :  { %1784 = vmatprep.subr.bf16.mxu0 %v1783_v20 }
  0x14   :  { %1592 = vmatmul.mubr.msk.f32.vlgmr.msra.gmra.mrb[0].mxu0 %vm84_vm0, %v22_v13 }
  0x15   :  { %1594 = vmatprep.mubr.msk.f32.mxu0 %vm84_vm0, %v23_v14 }
  0x18   :  { %1595 = vmatmul.mubr.msk.f32.gmra.mrb[2].mxu0 %vm84_vm0, %v24_v19 }
  0x19   :  { %10 = vsyncpa [#allocation3], 0  ;;  %1597 = vmatprep.mubr.msk.f32.mxu0 %vm84_vm0, %v25_v21  ;;  %v26_v25 = vld [vmem:[%s2273_s0 + $0x28] sm:$0xff]  ;;  %1786 = vmatpush3.bf16.msra.mxu0 %v1783_v20  ;;  %v27_v26 = vld [vmem:[%s2273_s0 + $0x30] sm:$0xff]  ;;  %v1791_v27 = vpack.c.bf16 %v587_v24, %v586_v23 }
  0x1a   :  { %1788 = vmatprep.subr.bf16.mxu0 %v1787_v22  ;;  %1816 = vmatprep.subr.bf16.mxu1 %v1787_v22  ;;  %v588_v28 = vld [vmem:[%s2276_s3 + $0x30] sm:$0xff]  ;;  %v589_v29 = vld [vmem:[%s2276_s3 + $0x38] sm:$0xff]  ;;  %v29_v31 = vld [vmem:[%s2273_s0 + $0x40] sm:$0xff] }
  0x1b   :  { %1824 = vmatpush3.bf16.msra.mxu1 %v1787_v22  ;;  %v28_v30 = vld [vmem:[%s2273_s0 + $0x38] sm:$0xff]  ;;  %v1795_v32 = vpack.c.bf16 %v589_v29, %v588_v28  ;;  %v590_v33 = vld [vmem:[%s2276_s3 + $0x40] sm:$0xff]  ;;  %v591_v34 = vld [vmem:[%s2276_s3 + $0x48] sm:$0xff] }
  0x1c   :  { %1598 = vmatmul.mubr.msk.f32.gmra.mrb[4].mxu0 %vm84_vm0, %v26_v25  ;;  %1817 = vmatprep.subr.bf16.mxu1 %v1791_v27  ;;  %v30_v35 = vld [vmem:[%s2273_s0 + $0x48] sm:$0xff]  ;;  %v31_v36 = vld [vmem:[%s2273_s0 + $0x50] sm:$0xff]  ;;  %v1799_v37 = vpack.c.bf16 %v591_v34, %v590_v33  ;;  %v593_v39 = vld [vmem:[%s2276_s3 + $0x58] sm:$0xff] }
  0x1d   :  { %1600 = vmatprep.mubr.msk.f32.mxu0 %vm84_vm0, %v27_v26  ;;  %1790 = vmatpush3.bf16.msra.mxu0 %v1787_v22  ;;  %v592_v38 = vld [vmem:[%s2276_s3 + $0x50] sm:$0xff]  ;;  %v32_v40 = vld [vmem:[%s2273_s0 + $0x58] sm:$0xff]  ;;  %v33_v41 = vld [vmem:[%s2273_s0 + $0x60] sm:$0xff] }
  0x1e   :  { %1792 = vmatprep.subr.bf16.mxu0 %v1791_v27  ;;  %v1803_v42 = vpack.c.bf16 %v593_v39, %v592_v38  ;;  %v594_v43 = vld [vmem:[%s2276_s3 + $0x60] sm:$0xff]  ;;  %v595_v44 = vld [vmem:[%s2276_s3 + $0x68] sm:$0xff]  ;;  %v35_v46 = vld [vmem:[%s2273_s0 + $0x70] sm:$0xff] }
  0x1f   :  { %1825 = vmatpush3.bf16.msra.mxu1 %v1791_v27  ;;  %v34_v45 = vld [vmem:[%s2273_s0 + $0x68] sm:$0xff]  ;;  %v1807_v47 = vpack.c.bf16 %v595_v44, %v594_v43  ;;  %v36_v48 = vld [vmem:[%s2273_s0 + $0x78] sm:$0xff]  ;;  %v37_v49 = vld [vmem:[%s2273_s0 + $0x80] sm:$0xff] }
  0x20   :  { %1601 = vmatmul.mubr.msk.f32.gmra.mrb[6].mxu0 %vm84_vm0, %v28_v30  ;;  %1818 = vmatprep.subr.bf16.mxu1 %v1795_v32  ;;  %v38_v50 = vld [vmem:[%s2273_s0 + $0x88] sm:$0xff]  ;;  %v39_v51 = vld [vmem:[%s2273_s0 + $0x90] sm:$0xff]  ;;  %v40_v52 = vld [vmem:[%s2273_s0 + $0x98] sm:$0xff] }
  0x21   :  { %1603 = vmatprep.mubr.msk.f32.mxu0 %vm84_vm0, %v29_v31  ;;  %1794 = vmatpush3.bf16.msra.mxu0 %v1791_v27  ;;  %v41_v53 = vld [vmem:[%s2273_s0 + $0xa0] sm:$0xff]  ;;  %v42_v54 = vld [vmem:[%s2273_s0 + $0xa8] sm:$0xff]  ;;  %v43_v55 = vld [vmem:[%s2273_s0 + $0xb0] sm:$0xff] }
  0x22   :  { %1796 = vmatprep.subr.bf16.mxu0 %v1795_v32  ;;  %v44_v56 = vld [vmem:[%s2273_s0 + $0xb8] sm:$0xff]  ;;  %v45_v57 = vld [vmem:[%s2273_s0 + $0xc0] sm:$0xff]  ;;  %v46_v58 = vld [vmem:[%s2273_s0 + $0xc8] sm:$0xff] }
  0x23   :  { %1826 = vmatpush3.bf16.msra.mxu1 %v1795_v32  ;;  %v47_v59 = vld [vmem:[%s2273_s0 + $0xd0] sm:$0xff]  ;;  %v48_v60 = vld [vmem:[%s2273_s0 + $0xd8] sm:$0xff]  ;;  %v49_v61 = vld [vmem:[%s2273_s0 + $0xe0] sm:$0xff] }
  0x24   :  { %1604 = vmatmul.mubr.msk.f32.gmra.mrb[8].mxu0 %vm84_vm0, %v30_v35  ;;  %1819 = vmatprep.subr.bf16.mxu1 %v1799_v37  ;;  %v50_v62 = vld [vmem:[%s2273_s0 + $0xe8] sm:$0xff]  ;;  %v51_v63 = vld [vmem:[%s2273_s0 + $0xf0] sm:$0xff]  ;;  %v52_v0 = vld [vmem:[%s2273_s0 + $0xf8] sm:$0xff] }
  0x25   :  { %1606 = vmatprep.mubr.msk.f32.mxu0 %vm84_vm0, %v31_v36  ;;  %1798 = vmatpush3.bf16.msra.mxu0 %v1795_v32  ;;  %v53_v1 = vld [vmem:[%s2273_s0 + $0x100] sm:$0xff]  ;;  %v54_v2 = vld [vmem:[%s2273_s0 + $0x108] sm:$0xff]  ;;  %v55_v3 = vld [vmem:[%s2273_s0 + $0x110] sm:$0xff] }
  0x26   :  { %1800 = vmatprep.subr.bf16.mxu0 %v1799_v37  ;;  %v56_v4 = vld [vmem:[%s2273_s0 + $0x118] sm:$0xff]  ;;  %v57_v5 = vld [vmem:[%s2273_s0 + $0x120] sm:$0xff]  ;;  %v58_v6 = vld [vmem:[%s2273_s0 + $0x128] sm:$0xff] }
  0x27   :  { %1827 = vmatpush3.bf16.msra.mxu1 %v1799_v37  ;;  %v59_v7 = vld [vmem:[%s2273_s0 + $0x130] sm:$0xff]  ;;  %v60_v8 = vld [vmem:[%s2273_s0 + $0x138] sm:$0xff]  ;;  %v61_v9 = vld [vmem:[%s2273_s0 + $0x140] sm:$0xff] }
  0x28   :  { %1607 = vmatmul.mubr.msk.f32.gmra.mrb[10].mxu0 %vm84_vm0, %v32_v40  ;;  %1820 = vmatprep.subr.bf16.mxu1 %v1803_v42  ;;  %v62_v10 = vld [vmem:[%s2273_s0 + $0x148] sm:$0xff]  ;;  %v63_v11 = vld [vmem:[%s2273_s0 + $0x150] sm:$0xff]  ;;  %v64_v12 = vld [vmem:[%s2273_s0 + $0x158] sm:$0xff] }
  0x29   :  { %1609 = vmatprep.mubr.msk.f32.mxu0 %vm84_vm0, %v33_v41  ;;  %1802 = vmatpush3.bf16.msra.mxu0 %v1799_v37  ;;  %v65_v13 = vld [vmem:[%s2273_s0 + $0x160] sm:$0xff]  ;;  %v596_v14 = vld [vmem:[%s2276_s3 + $0x70] sm:$0xff]  ;;  %v597_v15 = vld [vmem:[%s2276_s3 + $0x78] sm:$0xff] }
  0x2a   :  { %1804 = vmatprep.subr.bf16.mxu0 %v1803_v42  ;;  %v1811_v16 = vpack.c.bf16 %v597_v15, %v596_v14  ;;  %v66_v17 = vld [vmem:[%s2273_s0 + $0x168] sm:$0xff]  ;;  %v67_v18 = vld [vmem:[%s2273_s0 + $0x170] sm:$0xff]  ;;  %v68_v19 = vld [vmem:[%s2273_s0 + $0x178] sm:$0xff] }
  0x2b   :  { %1828 = vmatpush3.bf16.msra.mxu1 %v1803_v42  ;;  %v2158_v20 = vld [vmem:[%s2275_s2] ss:$0 sm:$0xff] }
  0x2c   :  { %1610 = vmatmul.mubr.msk.f32.gmra.mrb[12].mxu0 %vm84_vm0, %v34_v45  ;;  %1821 = vmatprep.subr.bf16.mxu1 %v1807_v47 }
  0x2d   :  { %1612 = vmatprep.mubr.msk.f32.mxu0 %vm84_vm0, %v35_v46  ;;  %1806 = vmatpush3.bf16.msra.mxu0 %v1803_v42 }
  0x2e   :  { %1808 = vmatprep.subr.bf16.mxu0 %v1807_v47 }
  0x2f   :  { %1829 = vmatpush3.bf16.msra.mxu1 %v1807_v47 }
  0x30   :  { %1613 = vmatmul.mubr.msk.f32.gmra.mrb[14].mxu0 %vm84_vm0, %v36_v48  ;;  %1822 = vmatprep.subr.bf16.mxu1 %v1811_v16 }
  0x31   :  { %1615 = vmatprep.mubr.msk.f32.mxu0 %vm84_vm0, %v37_v49  ;;  %1810 = vmatpush3.bf16.msra.mxu0 %v1807_v47 }
  0x32   :  { %1812 = vmatprep.subr.bf16.mxu0 %v1811_v16 }
  0x33   :  { %1830 = vmatpush3.bf16.msra.mxu1 %v1811_v16 }
  0x34   :  { %1616 = vmatmul.mubr.msk.f32.gmra.mrb[16].mxu0 %vm84_vm0, %v38_v50 }
  0x35   :  { %1618 = vmatprep.mubr.msk.f32.mxu0 %vm84_vm0, %v39_v51  ;;  %1814 = vmatpush3.bf16.msra.mxu0 %v1811_v16 }
  0x38   :  { %1619 = vmatmul.mubr.msk.f32.gmra.mrb[18].mxu0 %vm84_vm0, %v40_v52 }
  0x39   :  { %1621 = vmatprep.mubr.msk.f32.mxu0 %vm84_vm0, %v41_v53 }
  0x3c   :  { %1622 = vmatmul.mubr.msk.f32.gmra.mrb[20].mxu0 %vm84_vm0, %v42_v54 }
  0x3d   :  { %1624 = vmatprep.mubr.msk.f32.mxu0 %vm84_vm0, %v43_v55 }
  0x40   :  { %1625 = vmatmul.mubr.msk.f32.gmra.mrb[22].mxu0 %vm84_vm0, %v44_v56 }
  0x41   :  { %1627 = vmatprep.mubr.msk.f32.mxu0 %vm84_vm0, %v45_v57 }
  0x44   :  { %1628 = vmatmul.mubr.msk.f32.gmra.mrb[24].mxu0 %vm84_vm0, %v46_v58 }
  0x45   :  { %1630 = vmatprep.mubr.msk.f32.mxu0 %vm84_vm0, %v47_v59 }
  0x48   :  { %1631 = vmatmul.mubr.msk.f32.gmra.mrb[26].mxu0 %vm84_vm0, %v48_v60 }
  0x49   :  { %1633 = vmatprep.mubr.msk.f32.mxu0 %vm84_vm0, %v49_v61 }
  0x4c   :  { %1634 = vmatmul.mubr.msk.f32.gmra.mrb[28].mxu0 %vm84_vm0, %v50_v62 }
  0x4d   :  { %1636 = vmatprep.mubr.msk.f32.mxu0 %vm84_vm0, %v51_v63 }
  0x50   :  { %1637 = vmatmul.mubr.msk.f32.gmra.mrb[30].mxu0 %vm84_vm0, %v52_v0 }
  0x51   :  { %1639 = vmatprep.mubr.msk.f32.mxu0 %vm84_vm0, %v53_v1 }
  0x54   :  { %1640 = vmatmul.mubr.msk.f32.gmra.mrb[32].mxu0 %vm84_vm0, %v54_v2 }
  0x55   :  { %1642 = vmatprep.mubr.msk.f32.mxu0 %vm84_vm0, %v55_v3 }
  0x58   :  { %1643 = vmatmul.mubr.msk.f32.gmra.mrb[34].mxu0 %vm84_vm0, %v56_v4 }
  0x59   :  { %1645 = vmatprep.mubr.msk.f32.mxu0 %vm84_vm0, %v57_v5 }
  0x5c   :  { %1646 = vmatmul.mubr.msk.f32.gmra.mrb[36].mxu0 %vm84_vm0, %v58_v6 }
  0x5d   :  { %1648 = vmatprep.mubr.msk.f32.mxu0 %vm84_vm0, %v59_v7 }
  0x60   :  { %1649 = vmatmul.mubr.msk.f32.gmra.mrb[38].mxu0 %vm84_vm0, %v60_v8 }
  0x61   :  { %1651 = vmatprep.mubr.msk.f32.mxu0 %vm84_vm0, %v61_v9 }
  0x64   :  { %1652 = vmatmul.mubr.msk.f32.gmra.mrb[40].mxu0 %vm84_vm0, %v62_v10 }
  0x65   :  { %1654 = vmatprep.mubr.msk.f32.mxu0 %vm84_vm0, %v63_v11 }
  0x68   :  { %1655 = vmatmul.mubr.msk.f32.gmra.mrb[42].mxu0 %vm84_vm0, %v64_v12 }
  0x69   :  { %1657 = vmatprep.mubr.msk.f32.mxu0 %vm84_vm0, %v65_v13 }
  0x6c   :  { %1658 = vmatmul.mubr.msk.f32.gmra.mrb[44].mxu0 %vm84_vm0, %v66_v17 }
  0x6d   :  { %1660 = vmatprep.mubr.msk.f32.mxu0 %vm84_vm0, %v67_v18 }
  0x70   :  { %1661 = vmatmul.mubr.msk.f32.gmra.mrb[46].mxu0 %vm84_vm0, %v68_v19 }
  0xe7   :  { %v1593_v21 = vpop.f32.mrb[0].mxu0 }
  0xe8   :  { %v301_v22 = vadd.f32 %v1593_v21, %v2158_v20  ;;  %v295_v23 = vpop.f32.mrb[1].mxu0 }
  0xe9   :  { %v296_v24 = vadd.f32 %v2158_v20, %v295_v23 }
  0xea   :  { %v535_v27 = vmax.f32 %v301_v22, 0.0 }
  0xeb   :  { %v534_v25 = vmax.f32 %v296_v24, 0.0  ;;  %v1596_v26 = vpop.f32.mrb[2].mxu0 }
  0xec   :  { %v311_v28 = vadd.f32 %v1596_v26, %v2158_v20  ;;  %v305_v29 = vpop.f32.mrb[3].mxu0 }
  0xed   :  { %v306_v30 = vadd.f32 %v2158_v20, %v305_v29  ;;  %1695 = vmatprep.mubr.f32.mxu0 %v534_v25 }
  0xee   :  { %1696 = vmatmul.mubr.f32.vlgmr.msra.gmra.mrb[48].mxu0 %v535_v27  ;;  %v537_v33 = vmax.f32 %v311_v28, 0.0 }
  0xef   :  { %v536_v31 = vmax.f32 %v306_v30, 0.0  ;;  %v1599_v32 = vpop.f32.mrb[4].mxu0 }
  0xf0   :  { %v321_v34 = vadd.f32 %v1599_v32, %v2158_v20  ;;  %v315_v35 = vpop.f32.mrb[5].mxu0 }
  0xf1   :  { %1698 = vmatprep.mubr.f32.mxu0 %v536_v31  ;;  %v316_v36 = vadd.f32 %v2158_v20, %v315_v35 }
  0xf2   :  { %1699 = vmatmul.mubr.f32.gmra.mrb[50].mxu0 %v537_v33  ;;  %v539_v39 = vmax.f32 %v321_v34, 0.0 }
  0xf3   :  { %v1602_v37 = vpop.f32.mrb[6].mxu0  ;;  %v538_v38 = vmax.f32 %v316_v36, 0.0 }
  0xf4   :  { %v331_v40 = vadd.f32 %v1602_v37, %v2158_v20  ;;  %v325_v41 = vpop.f32.mrb[7].mxu0 }
  0xf5   :  { %v326_v42 = vadd.f32 %v2158_v20, %v325_v41  ;;  %1701 = vmatprep.mubr.f32.mxu1 %v538_v38 }
  0xf6   :  { %1702 = vmatmul.mubr.f32.vlgmr.msra.gmra.mrb[0].mxu1 %v539_v39  ;;  %v541_v45 = vmax.f32 %v331_v40, 0.0 }
  0xf7   :  { %v540_v43 = vmax.f32 %v326_v42, 0.0  ;;  %v1605_v44 = vpop.f32.mrb[8].mxu0 }
  0xf8   :  { %v341_v46 = vadd.f32 %v1605_v44, %v2158_v20  ;;  %v335_v47 = vpop.f32.mrb[9].mxu0 }
  0xf9   :  { %v336_v48 = vadd.f32 %v2158_v20, %v335_v47  ;;  %1704 = vmatprep.mubr.f32.mxu1 %v540_v43 }
  0xfa   :  { %1705 = vmatmul.mubr.f32.gmra.mrb[2].mxu1 %v541_v45  ;;  %v543_v51 = vmax.f32 %v341_v46, 0.0 }
  0xfb   :  { %v542_v49 = vmax.f32 %v336_v48, 0.0  ;;  %v1608_v50 = vpop.f32.mrb[10].mxu0 }
  0xfc   :  { %v351_v52 = vadd.f32 %v1608_v50, %v2158_v20  ;;  %v345_v53 = vpop.f32.mrb[11].mxu0 }
  0xfd   :  { %v346_v54 = vadd.f32 %v2158_v20, %v345_v53  ;;  %1707 = vmatprep.mubr.f32.mxu1 %v542_v49 }
  0xfe   :  { %1708 = vmatmul.mubr.f32.gmra.mrb[4].mxu1 %v543_v51  ;;  %v545_v57 = vmax.f32 %v351_v52, 0.0 }
  0xff   :  { %v544_v55 = vmax.f32 %v346_v54, 0.0  ;;  %v1611_v56 = vpop.f32.mrb[12].mxu0 }
 0x100   :  { %v361_v58 = vadd.f32 %v1611_v56, %v2158_v20  ;;  %v355_v59 = vpop.f32.mrb[13].mxu0 }
 0x101   :  { %v356_v60 = vadd.f32 %v2158_v20, %v355_v59  ;;  %1710 = vmatprep.mubr.f32.mxu1 %v544_v55 }
 0x102   :  { %1711 = vmatmul.mubr.f32.gmra.mrb[6].mxu1 %v545_v57  ;;  %v547_v63 = vmax.f32 %v361_v58, 0.0 }
 0x103   :  { %v546_v61 = vmax.f32 %v356_v60, 0.0  ;;  %v1614_v62 = vpop.f32.mrb[14].mxu0 }
 0x104   :  { %v371_v0 = vadd.f32 %v1614_v62, %v2158_v20  ;;  %v365_v1 = vpop.f32.mrb[15].mxu0 }
 0x105   :  { %v366_v2 = vadd.f32 %v2158_v20, %v365_v1  ;;  %1713 = vmatprep.mubr.f32.mxu1 %v546_v61 }
 0x106   :  { %1714 = vmatmul.mubr.f32.gmra.mrb[8].mxu1 %v547_v63  ;;  %v549_v5 = vmax.f32 %v371_v0, 0.0 }
 0x107   :  { %v548_v3 = vmax.f32 %v366_v2, 0.0  ;;  %v1617_v4 = vpop.f32.mrb[16].mxu0 }
 0x108   :  { %v381_v6 = vadd.f32 %v1617_v4, %v2158_v20  ;;  %v375_v7 = vpop.f32.mrb[17].mxu0 }
 0x109   :  { %v376_v8 = vadd.f32 %v2158_v20, %v375_v7  ;;  %1716 = vmatprep.mubr.f32.mxu1 %v548_v3 }
 0x10a   :  { %1717 = vmatmul.mubr.f32.gmra.mrb[10].mxu1 %v549_v5  ;;  %v551_v11 = vmax.f32 %v381_v6, 0.0 }
 0x10b   :  { %v550_v9 = vmax.f32 %v376_v8, 0.0  ;;  %v1620_v10 = vpop.f32.mrb[18].mxu0 }
 0x10c   :  { %v391_v12 = vadd.f32 %v1620_v10, %v2158_v20  ;;  %v385_v13 = vpop.f32.mrb[19].mxu0 }
 0x10d   :  { %v386_v14 = vadd.f32 %v2158_v20, %v385_v13  ;;  %1719 = vmatprep.mubr.f32.mxu1 %v550_v9 }
 0x10e   :  { %1720 = vmatmul.mubr.f32.gmra.mrb[12].mxu1 %v551_v11  ;;  %v553_v17 = vmax.f32 %v391_v12, 0.0 }
 0x10f   :  { %v552_v15 = vmax.f32 %v386_v14, 0.0  ;;  %v1623_v16 = vpop.f32.mrb[20].mxu0 }
 0x110   :  { %v401_v18 = vadd.f32 %v1623_v16, %v2158_v20  ;;  %v395_v19 = vpop.f32.mrb[21].mxu0 }
 0x111   :  { %v396_v21 = vadd.f32 %v2158_v20, %v395_v19  ;;  %1722 = vmatprep.mubr.f32.mxu1 %v552_v15 }
 0x112   :  { %1723 = vmatmul.mubr.f32.gmra.mrb[14].mxu1 %v553_v17  ;;  %v555_v24 = vmax.f32 %v401_v18, 0.0 }
 0x113   :  { %v554_v22 = vmax.f32 %v396_v21, 0.0  ;;  %v1626_v23 = vpop.f32.mrb[22].mxu0 }
 0x114   :  { %v411_v25 = vadd.f32 %v1626_v23, %v2158_v20  ;;  %v405_v26 = vpop.f32.mrb[23].mxu0 }
 0x115   :  { %v406_v27 = vadd.f32 %v2158_v20, %v405_v26  ;;  %1725 = vmatprep.mubr.f32.mxu1 %v554_v22 }
 0x116   :  { %1726 = vmatmul.mubr.f32.gmra.mrb[16].mxu1 %v555_v24  ;;  %v557_v30 = vmax.f32 %v411_v25, 0.0 }
 0x117   :  { %v556_v28 = vmax.f32 %v406_v27, 0.0  ;;  %v1629_v29 = vpop.f32.mrb[24].mxu0 }
 0x118   :  { %v421_v31 = vadd.f32 %v1629_v29, %v2158_v20  ;;  %v415_v32 = vpop.f32.mrb[25].mxu0 }
 0x119   :  { %v416_v33 = vadd.f32 %v2158_v20, %v415_v32  ;;  %1728 = vmatprep.mubr.f32.mxu1 %v556_v28 }
 0x11a   :  { %1729 = vmatmul.mubr.f32.gmra.mrb[18].mxu1 %v557_v30  ;;  %v559_v36 = vmax.f32 %v421_v31, 0.0 }
 0x11b   :  { %v558_v34 = vmax.f32 %v416_v33, 0.0  ;;  %v1632_v35 = vpop.f32.mrb[26].mxu0 }
 0x11c   :  { %v431_v37 = vadd.f32 %v1632_v35, %v2158_v20  ;;  %v425_v38 = vpop.f32.mrb[27].mxu0 }
 0x11d   :  { %v426_v39 = vadd.f32 %v2158_v20, %v425_v38  ;;  %1731 = vmatprep.mubr.f32.mxu1 %v558_v34 }
 0x11e   :  { %1732 = vmatmul.mubr.f32.gmra.mrb[20].mxu1 %v559_v36  ;;  %v561_v42 = vmax.f32 %v431_v37, 0.0 }
 0x11f   :  { %v560_v40 = vmax.f32 %v426_v39, 0.0  ;;  %v1635_v41 = vpop.f32.mrb[28].mxu0  ;;  %v2211_v39 = vld [vmem:[%s2277_s4] ss:$0 sm:$0xff]  ;;  %s1858_s4 = smov [#allocation2]  }
 0x120   :  { %v441_v43 = vadd.f32 %v1635_v41, %v2158_v20  ;;  %v435_v44 = vpop.f32.mrb[29].mxu0  ;;  %s1155_s8 = sshll.u32 %s1858_s4, 4  ;;  %s1156_s8 = int_to_ptr.vmem [resolvable:$true] %s1155_s8 }
 0x121   :  { %v436_v45 = vadd.f32 %v2158_v20, %v435_v44  ;;  %1734 = vmatprep.mubr.f32.mxu1 %v560_v40  ;;  %s1834_s9 = scalar_lea.vmem %s1156_s8, 3072  ;;  %p1839_p1 = scmp.lt.s32.totalorder %s1156_s8, %s1156_s8 }
 0x122   :  { %1735 = vmatmul.mubr.f32.gmra.mrb[22].mxu1 %v561_v42  ;;  %v563_v48 = vmax.f32 %v441_v43, 0.0  ;;  %p1835_p0 = scmp.ne.s32.totalorder %s1156_s8, %s1834_s9  ;;  %p1840_p2 = scmp.lt.s32.totalorder %s1834_s9, %s1834_s9 }
 0x123   :  { %v562_v46 = vmax.f32 %v436_v45, 0.0  ;;  %v1638_v47 = vpop.f32.mrb[30].mxu0 }
 0x124   :  { %v451_v49 = vadd.f32 %v1638_v47, %v2158_v20  ;;  %v445_v50 = vpop.f32.mrb[31].mxu0  ;;  %p1841_p3 = por %p1840_p2, %p1839_p1 }
 0x125   :  { %v446_v51 = vadd.f32 %v2158_v20, %v445_v50  ;;  %1737 = vmatprep.mubr.f32.mxu1 %v562_v46 }
 0x126   :  { %1738 = vmatmul.mubr.f32.gmra.mrb[24].mxu1 %v563_v48  ;;  %v565_v54 = vmax.f32 %v451_v49, 0.0  ;;  %p1842_p4 = pnand %p1841_p3, %p1835_p0 }
 0x127   :  { %v564_v52 = vmax.f32 %v446_v51, 0.0  ;;  %v1641_v53 = vpop.f32.mrb[32].mxu0 }
 0x128   :  { %v461_v55 = vadd.f32 %v1641_v53, %v2158_v20  ;;  %v455_v56 = vpop.f32.mrb[33].mxu0 }
 0x129   :  { %v456_v57 = vadd.f32 %v2158_v20, %v455_v56  ;;  %1740 = vmatprep.mubr.f32.mxu1 %v564_v52 }
 0x12a   :  { %1741 = vmatmul.mubr.f32.gmra.mrb[26].mxu1 %v565_v54  ;;  %v567_v60 = vmax.f32 %v461_v55, 0.0 }
 0x12b   :  { %v566_v58 = vmax.f32 %v456_v57, 0.0  ;;  %v1644_v59 = vpop.f32.mrb[34].mxu0 }
 0x12c   :  { %v471_v61 = vadd.f32 %v1644_v59, %v2158_v20  ;;  %v465_v62 = vpop.f32.mrb[35].mxu0 }
 0x12d   :  { %v466_v63 = vadd.f32 %v2158_v20, %v465_v62  ;;  %1743 = vmatprep.mubr.f32.mxu1 %v566_v58 }
 0x12e   :  { %1744 = vmatmul.mubr.f32.gmra.mrb[28].mxu1 %v567_v60  ;;  %v569_v2 = vmax.f32 %v471_v61, 0.0 }
 0x12f   :  { %v568_v0 = vmax.f32 %v466_v63, 0.0  ;;  %v1647_v1 = vpop.f32.mrb[36].mxu0 }
 0x130   :  { %v481_v3 = vadd.f32 %v1647_v1, %v2158_v20  ;;  %v475_v4 = vpop.f32.mrb[37].mxu0 }
 0x131   :  { %v476_v5 = vadd.f32 %v2158_v20, %v475_v4  ;;  %1746 = vmatprep.mubr.f32.mxu1 %v568_v0 }
 0x132   :  { %1747 = vmatmul.mubr.f32.gmra.mrb[30].mxu1 %v569_v2  ;;  %v571_v8 = vmax.f32 %v481_v3, 0.0 }
 0x133   :  { %v570_v6 = vmax.f32 %v476_v5, 0.0  ;;  %v1650_v7 = vpop.f32.mrb[38].mxu0 }
 0x134   :  { %v491_v9 = vadd.f32 %v1650_v7, %v2158_v20  ;;  %v485_v10 = vpop.f32.mrb[39].mxu0 }
 0x135   :  { %v486_v11 = vadd.f32 %v2158_v20, %v485_v10  ;;  %1749 = vmatprep.mubr.f32.mxu1 %v570_v6 }
 0x136   :  { %1750 = vmatmul.mubr.f32.gmra.mrb[32].mxu1 %v571_v8  ;;  %v573_v14 = vmax.f32 %v491_v9, 0.0 }
 0x137   :  { %v572_v12 = vmax.f32 %v486_v11, 0.0  ;;  %v1653_v13 = vpop.f32.mrb[40].mxu0 }
 0x138   :  { %v501_v15 = vadd.f32 %v1653_v13, %v2158_v20  ;;  %v495_v16 = vpop.f32.mrb[41].mxu0 }
 0x139   :  { %v496_v17 = vadd.f32 %v2158_v20, %v495_v16  ;;  %1752 = vmatprep.mubr.f32.mxu1 %v572_v12 }
 0x13a   :  { %1753 = vmatmul.mubr.f32.gmra.mrb[34].mxu1 %v573_v14  ;;  %v575_v21 = vmax.f32 %v501_v15, 0.0 }
 0x13b   :  { %v574_v18 = vmax.f32 %v496_v17, 0.0  ;;  %v1656_v19 = vpop.f32.mrb[42].mxu0 }
 0x13c   :  { %v511_v22 = vadd.f32 %v1656_v19, %v2158_v20  ;;  %v505_v23 = vpop.f32.mrb[43].mxu0 }
 0x13d   :  { %v506_v24 = vadd.f32 %v2158_v20, %v505_v23  ;;  %1755 = vmatprep.mubr.f32.mxu1 %v574_v18 }
 0x13e   :  { %1756 = vmatmul.mubr.f32.gmra.mrb[36].mxu1 %v575_v21  ;;  %v577_v27 = vmax.f32 %v511_v22, 0.0 }
 0x13f   :  { %v576_v25 = vmax.f32 %v506_v24, 0.0  ;;  %v1659_v26 = vpop.f32.mrb[44].mxu0 }
 0x140   :  { %v521_v28 = vadd.f32 %v1659_v26, %v2158_v20  ;;  %v515_v29 = vpop.f32.mrb[45].mxu0 }
 0x141   :  { %v516_v30 = vadd.f32 %v2158_v20, %v515_v29  ;;  %1758 = vmatprep.mubr.f32.mxu1 %v576_v25 }
 0x142   :  { %1759 = vmatmul.mubr.f32.gmra.mrb[38].mxu1 %v577_v27  ;;  %v579_v33 = vmax.f32 %v521_v28, 0.0 }
 0x143   :  { %v578_v31 = vmax.f32 %v516_v30, 0.0  ;;  %v1662_v32 = vpop.f32.mrb[46].mxu0 }
 0x144   :  { %v531_v34 = vadd.f32 %v1662_v32, %v2158_v20  ;;  %v525_v35 = vpop.f32.mrb[47].mxu0 }
 0x145   :  { %v526_v36 = vadd.f32 %v2158_v20, %v525_v35  ;;  %1761 = vmatprep.mubr.f32.mxu1 %v578_v31 }
 0x146   :  { %1762 = vmatmul.mubr.f32.gmra.mrb[40].mxu1 %v579_v33  ;;  %v581_v38 = vmax.f32 %v531_v34, 0.0 }
 0x147   :  { %v580_v37 = vmax.f32 %v526_v36, 0.0 }
 0x149   :  { %1764 = vmatprep.mubr.f32.mxu1 %v580_v37 }
 0x14a   :  { %1765 = vmatmul.mubr.f32.gmra.mrb[42].mxu1 %v581_v38 }
 0x1c1   :  { %v1697_v40 = vpop.f32.mrb[48].mxu0 }
 0x1c2   :  { %v677_v41 = vadd.f32 %v1697_v40, %v2211_v39  ;;  %v671_v42 = vpop.f32.mrb[49].mxu0 }
 0x1c3   :  { %v672_v43 = vadd.f32 %v2211_v39, %v671_v42 }
 0x1c5   :  { %v1315_v44 = vpack.c.bf16 %v677_v41, %v672_v43  ;;  %v1700_v45 = vpop.f32.mrb[50].mxu0 }
 0x1c6   :  { %v687_v20 = vadd.f32 %v1700_v45, %v2211_v39  ;;  %v681_v46 = vpop.f32.mrb[51].mxu0 }
 0x1c7   :  { %1316 = vst [vmem:[#allocation2] sm:$0xff] %v1315_v44   ;;  %v682_v47 = vadd.f32 %v2211_v39, %v681_v46 }
 0x1c9   :  { %v1320_v48 = vpack.c.bf16 %v687_v20, %v682_v47  ;;  %v1703_v49 = vpop.f32.mrb[0].mxu1 }
 0x1ca   :  { %v697_v50 = vadd.f32 %v1703_v49, %v2211_v39  ;;  %v691_v51 = vpop.f32.mrb[1].mxu1 }
 0x1cb   :  { %1432 = vst [vmem:[#allocation2 + $0x8] sm:$0xff] %v1320_v48   ;;  %v692_v52 = vadd.f32 %v2211_v39, %v691_v51 }
 0x1cd   :  { %v1325_v53 = vpack.c.bf16 %v697_v50, %v692_v52  ;;  %v1706_v54 = vpop.f32.mrb[2].mxu1 }
 0x1ce   :  { %v707_v55 = vadd.f32 %v1706_v54, %v2211_v39  ;;  %v701_v56 = vpop.f32.mrb[3].mxu1 }
 0x1cf   :  { %1433 = vst [vmem:[#allocation2 + $0x10] sm:$0xff] %v1325_v53   ;;  %v702_v57 = vadd.f32 %v2211_v39, %v701_v56 }
 0x1d1   :  { %v1330_v58 = vpack.c.bf16 %v707_v55, %v702_v57  ;;  %v1709_v59 = vpop.f32.mrb[4].mxu1 }
 0x1d2   :  { %v717_v60 = vadd.f32 %v1709_v59, %v2211_v39  ;;  %v711_v61 = vpop.f32.mrb[5].mxu1 }
 0x1d3   :  { %1434 = vst [vmem:[#allocation2 + $0x18] sm:$0xff] %v1330_v58   ;;  %v712_v62 = vadd.f32 %v2211_v39, %v711_v61 }
 0x1d5   :  { %v1335_v63 = vpack.c.bf16 %v717_v60, %v712_v62  ;;  %v1712_v0 = vpop.f32.mrb[6].mxu1 }
 0x1d6   :  { %v727_v1 = vadd.f32 %v1712_v0, %v2211_v39  ;;  %v721_v2 = vpop.f32.mrb[7].mxu1 }
 0x1d7   :  { %1435 = vst [vmem:[#allocation2 + $0x20] sm:$0xff] %v1335_v63   ;;  %v722_v3 = vadd.f32 %v2211_v39, %v721_v2 }
 0x1d9   :  { %v1340_v4 = vpack.c.bf16 %v727_v1, %v722_v3  ;;  %v1715_v5 = vpop.f32.mrb[8].mxu1 }
 0x1da   :  { %v737_v6 = vadd.f32 %v1715_v5, %v2211_v39  ;;  %v731_v7 = vpop.f32.mrb[9].mxu1 }
 0x1db   :  { %1436 = vst [vmem:[#allocation2 + $0x28] sm:$0xff] %v1340_v4   ;;  %v732_v8 = vadd.f32 %v2211_v39, %v731_v7 }
 0x1dd   :  { %v1345_v9 = vpack.c.bf16 %v737_v6, %v732_v8  ;;  %v1718_v10 = vpop.f32.mrb[10].mxu1 }
 0x1de   :  { %v747_v11 = vadd.f32 %v1718_v10, %v2211_v39  ;;  %v741_v12 = vpop.f32.mrb[11].mxu1 }
 0x1df   :  { %1437 = vst [vmem:[#allocation2 + $0x30] sm:$0xff] %v1345_v9   ;;  %v742_v13 = vadd.f32 %v2211_v39, %v741_v12 }
 0x1e1   :  { %v1350_v14 = vpack.c.bf16 %v747_v11, %v742_v13  ;;  %v1721_v15 = vpop.f32.mrb[12].mxu1 }
 0x1e2   :  { %v757_v16 = vadd.f32 %v1721_v15, %v2211_v39  ;;  %v751_v17 = vpop.f32.mrb[13].mxu1 }
 0x1e3   :  { %1438 = vst [vmem:[#allocation2 + $0x38] sm:$0xff] %v1350_v14   ;;  %v752_v18 = vadd.f32 %v2211_v39, %v751_v17 }
 0x1e5   :  { %v1355_v19 = vpack.c.bf16 %v757_v16, %v752_v18  ;;  %v1724_v21 = vpop.f32.mrb[14].mxu1 }
 0x1e6   :  { %v767_v22 = vadd.f32 %v1724_v21, %v2211_v39  ;;  %v761_v23 = vpop.f32.mrb[15].mxu1 }
 0x1e7   :  { %1439 = vst [vmem:[#allocation2 + $0x40] sm:$0xff] %v1355_v19   ;;  %v762_v24 = vadd.f32 %v2211_v39, %v761_v23 }
 0x1e9   :  { %v1360_v25 = vpack.c.bf16 %v767_v22, %v762_v24  ;;  %v1727_v26 = vpop.f32.mrb[16].mxu1 }
 0x1ea   :  { %v777_v27 = vadd.f32 %v1727_v26, %v2211_v39  ;;  %v771_v28 = vpop.f32.mrb[17].mxu1 }
 0x1eb   :  { %1440 = vst [vmem:[#allocation2 + $0x48] sm:$0xff] %v1360_v25   ;;  %v772_v29 = vadd.f32 %v2211_v39, %v771_v28 }
 0x1ed   :  { %v1365_v30 = vpack.c.bf16 %v777_v27, %v772_v29  ;;  %v1730_v31 = vpop.f32.mrb[18].mxu1 }
 0x1ee   :  { %v787_v32 = vadd.f32 %v1730_v31, %v2211_v39  ;;  %v781_v33 = vpop.f32.mrb[19].mxu1 }
 0x1ef   :  { %1441 = vst [vmem:[#allocation2 + $0x50] sm:$0xff] %v1365_v30   ;;  %v782_v34 = vadd.f32 %v2211_v39, %v781_v33 }
 0x1f1   :  { %v1370_v35 = vpack.c.bf16 %v787_v32, %v782_v34  ;;  %v1733_v36 = vpop.f32.mrb[20].mxu1 }
 0x1f2   :  { %v797_v37 = vadd.f32 %v1733_v36, %v2211_v39  ;;  %v791_v38 = vpop.f32.mrb[21].mxu1 }
 0x1f3   :  { %1442 = vst [vmem:[#allocation2 + $0x58] sm:$0xff] %v1370_v35   ;;  %v792_v40 = vadd.f32 %v2211_v39, %v791_v38 }
 0x1f5   :  { %v1375_v41 = vpack.c.bf16 %v797_v37, %v792_v40  ;;  %v1736_v42 = vpop.f32.mrb[22].mxu1 }
 0x1f6   :  { %v807_v43 = vadd.f32 %v1736_v42, %v2211_v39  ;;  %v801_v44 = vpop.f32.mrb[23].mxu1 }
 0x1f7   :  { %1443 = vst [vmem:[#allocation2 + $0x60] sm:$0xff] %v1375_v41   ;;  %v802_v45 = vadd.f32 %v2211_v39, %v801_v44 }
 0x1f9   :  { %v1380_v20 = vpack.c.bf16 %v807_v43, %v802_v45  ;;  %v1739_v46 = vpop.f32.mrb[24].mxu1 }
 0x1fa   :  { %v817_v47 = vadd.f32 %v1739_v46, %v2211_v39  ;;  %v811_v48 = vpop.f32.mrb[25].mxu1 }
 0x1fb   :  { %1444 = vst [vmem:[#allocation2 + $0x68] sm:$0xff] %v1380_v20   ;;  %v812_v49 = vadd.f32 %v2211_v39, %v811_v48 }
 0x1fd   :  { %v1385_v50 = vpack.c.bf16 %v817_v47, %v812_v49  ;;  %v1742_v51 = vpop.f32.mrb[26].mxu1 }
 0x1fe   :  { %v827_v52 = vadd.f32 %v1742_v51, %v2211_v39  ;;  %v821_v53 = vpop.f32.mrb[27].mxu1 }
 0x1ff   :  { %1445 = vst [vmem:[#allocation2 + $0x70] sm:$0xff] %v1385_v50   ;;  %v822_v54 = vadd.f32 %v2211_v39, %v821_v53 }
 0x201   :  { %v1390_v55 = vpack.c.bf16 %v827_v52, %v822_v54  ;;  %v1745_v56 = vpop.f32.mrb[28].mxu1 }
 0x202   :  { %v837_v57 = vadd.f32 %v1745_v56, %v2211_v39  ;;  %v831_v58 = vpop.f32.mrb[29].mxu1 }
 0x203   :  { %1446 = vst [vmem:[#allocation2 + $0x78] sm:$0xff] %v1390_v55   ;;  %v832_v59 = vadd.f32 %v2211_v39, %v831_v58 }
 0x205   :  { %v1395_v60 = vpack.c.bf16 %v837_v57, %v832_v59  ;;  %v1748_v61 = vpop.f32.mrb[30].mxu1 }
 0x206   :  { %v847_v62 = vadd.f32 %v1748_v61, %v2211_v39  ;;  %v841_v63 = vpop.f32.mrb[31].mxu1 }
 0x207   :  { %1447 = vst [vmem:[#allocation2 + $0x80] sm:$0xff] %v1395_v60   ;;  %v842_v0 = vadd.f32 %v2211_v39, %v841_v63 }
 0x209   :  { %v1400_v1 = vpack.c.bf16 %v847_v62, %v842_v0  ;;  %v1751_v2 = vpop.f32.mrb[32].mxu1 }
 0x20a   :  { %v857_v3 = vadd.f32 %v1751_v2, %v2211_v39  ;;  %v851_v4 = vpop.f32.mrb[33].mxu1 }
 0x20b   :  { %1448 = vst [vmem:[#allocation2 + $0x88] sm:$0xff] %v1400_v1   ;;  %v852_v5 = vadd.f32 %v2211_v39, %v851_v4 }
 0x20d   :  { %v1405_v6 = vpack.c.bf16 %v857_v3, %v852_v5  ;;  %v1754_v7 = vpop.f32.mrb[34].mxu1 }
 0x20e   :  { %v867_v8 = vadd.f32 %v1754_v7, %v2211_v39  ;;  %v861_v9 = vpop.f32.mrb[35].mxu1 }
 0x20f   :  { %1449 = vst [vmem:[#allocation2 + $0x90] sm:$0xff] %v1405_v6   ;;  %v862_v10 = vadd.f32 %v2211_v39, %v861_v9 }
 0x211   :  { %v1410_v11 = vpack.c.bf16 %v867_v8, %v862_v10  ;;  %v1757_v12 = vpop.f32.mrb[36].mxu1 }
 0x212   :  { %v877_v13 = vadd.f32 %v1757_v12, %v2211_v39  ;;  %v871_v14 = vpop.f32.mrb[37].mxu1 }
 0x213   :  { %1450 = vst [vmem:[#allocation2 + $0x98] sm:$0xff] %v1410_v11   ;;  %v872_v15 = vadd.f32 %v2211_v39, %v871_v14 }
 0x215   :  { %v1415_v16 = vpack.c.bf16 %v877_v13, %v872_v15  ;;  %v1760_v17 = vpop.f32.mrb[38].mxu1 }
 0x216   :  { %v887_v18 = vadd.f32 %v1760_v17, %v2211_v39  ;;  %v881_v19 = vpop.f32.mrb[39].mxu1 }
 0x217   :  { %1451 = vst [vmem:[#allocation2 + $0xa0] sm:$0xff] %v1415_v16   ;;  %v882_v21 = vadd.f32 %v2211_v39, %v881_v19 }
 0x219   :  { %v1420_v22 = vpack.c.bf16 %v887_v18, %v882_v21  ;;  %v1763_v23 = vpop.f32.mrb[40].mxu1 }
 0x21a   :  { %v897_v24 = vadd.f32 %v1763_v23, %v2211_v39  ;;  %v891_v25 = vpop.f32.mrb[41].mxu1 }
 0x21b   :  { %1452 = vst [vmem:[#allocation2 + $0xa8] sm:$0xff] %v1420_v22   ;;  %v892_v26 = vadd.f32 %v2211_v39, %v891_v25 }
 0x21d   :  { %v1425_v27 = vpack.c.bf16 %v897_v24, %v892_v26  ;;  %v1766_v28 = vpop.f32.mrb[42].mxu1 }
 0x21e   :  { %v907_v29 = vadd.f32 %v1766_v28, %v2211_v39  ;;  %v901_v30 = vpop.f32.mrb[43].mxu1 }
 0x21f   :  { %1453 = vst [vmem:[#allocation2 + $0xb0] sm:$0xff] %v1425_v27   ;;  %v902_v31 = vadd.f32 %v2211_v39, %v901_v30 }
 0x221   :  { %v1430_v32 = vpack.c.bf16 %v907_v29, %v902_v31 }
 0x223   :  { %1454 = vst [vmem:[#allocation2 + $0xb8] sm:$0xff] %v1430_v32  }
 0x224   :  { %1845 = shalt.err (!%p1842_p4)
}
 0x225   :  { %s1846_s12 = scalar_lea.hbm %s2278_s5, 3072 }
 0x226   :  { %p1847_p5 = scmp.ne.s32.totalorder %s2278_s5, %s1846_s12  ;;  %p1850_p6 = scmp.lt.u32.totalorder %s1846_s12, %s2278_s5 }
 0x228   :  { %p1852_p7 = pnand %p1850_p6, %p1847_p5 }
 0x22a   :  { %1855 = shalt.err (!%p1852_p7)
}
 0x22b   :  { %s1859_s1 = smov 64   ;;  %s1860_s17 = smov 4  }
 0x22c   :  { %1161 = dma.vmem_to_hbm [thread:$0]  %s1156_s8, 3072, %s2278_s5, [#allocation3], %s1859_s1, %s1859_s1, %s1860_s17  }
 0x22d   :  { %1856 = dma.done.wait [#allocation3], 3072  }
 0x22e   :  { %1857 = vsyncadd [#allocation3], 4294964224 }
 0x22f   :  { %1165 = vsyncpa [#allocation3], 1 }

</bundles_post_ra>
